<compile_context>
chip_gen: v6e
topology: v6e:2x2x1
jax: 0.10.0
libtpu: 0.0.40
codegen_flags: <defaults>
</compile_context>

<pallas_src>
import jax
import jax.numpy as jnp
from jax import lax
from jax.experimental import pallas as pl
from jax.experimental.pallas import tpu as pltpu


# ----------------------------- kernel helpers (traced in-kernel) -----------------------------

def _shift_right(a):
    """y[..., l] = a[..., l-1], zero at l=0 (matches conv zero padding)."""
    zero = jnp.zeros_like(a[..., :1])
    return jnp.concatenate([zero, a[..., :-1]], axis=-1)


def _shift_left(a):
    """y[..., l] = a[..., l+1], zero at l=L-1."""
    zero = jnp.zeros_like(a[..., :1])
    return jnp.concatenate([a[..., 1:], zero], axis=-1)


def _bmm(w, a):
    """w: (Cout, Cin), a: (Bblk, Cin, L) -> (Bblk, Cout, L), f32 accumulation."""
    bblk = a.shape[0]
    wb = jnp.broadcast_to(w[None], (bblk, w.shape[0], w.shape[1]))
    return jnp.einsum('boc,bcl->bol', wb, a, preferred_element_type=jnp.float32)


def _conv3(a, w_ref):
    """3-tap conv1d (kernel_size=3, padding=1, stride=1). w_ref: (3, Cout, Cin_a)."""
    return (_bmm(w_ref[0], _shift_right(a))
            + _bmm(w_ref[1], a)
            + _bmm(w_ref[2], _shift_left(a)))


def _block_path(x, w1_ref, b1_ref, w2_ref, b2_ref):
    h = _conv3(x, w1_ref) + b1_ref[...][None]          # conv1 + folded BN1
    h = jnp.maximum(h, 0.0)                            # ReLU
    return _conv3(h, w2_ref) + b2_ref[...][None]       # conv2 + folded BN2


# ----------------------------------------- kernels -----------------------------------------

def convblock_kernel_conv_skip(x_ref, w1_ref, b1_ref, w2_ref, b2_ref,
                               ws_ref, bs_ref, o_ref):
    x = x_ref[...].astype(jnp.float32)                 # (Bblk, Cin, L)
    y = _block_path(x, w1_ref, b1_ref, w2_ref, b2_ref)
    ident = _bmm(ws_ref[...], x) + bs_ref[...][None]   # 1x1 conv + folded BN
    o_ref[...] = jnp.maximum(y + ident, 0.0).astype(o_ref.dtype)


def convblock_kernel_identity_skip(x_ref, w1_ref, b1_ref, w2_ref, b2_ref, o_ref):
    x = x_ref[...].astype(jnp.float32)                 # (Bblk, C, L)
    y = _block_path(x, w1_ref, b1_ref, w2_ref, b2_ref)
    o_ref[...] = jnp.maximum(y + x, 0.0).astype(o_ref.dtype)


# ----------------------------------------- wrapper -----------------------------------------

def _fold_bn(w, bn, eps=1e-5):
    """Fold eval-mode BatchNorm1d into a bias-free conv: returns (w_folded, bias)."""
    s = bn['gamma'] * lax.rsqrt(bn['var'] + eps)
    return w * s[:, None, None], bn['beta'] - bn['mean'] * s


def convblock_forward(x, params, *, block_b=8):
    """Pallas forward for ConvBlock. x: (B, C_in, L), channels-first (PyTorch layout)."""
    B, cin, L = x.shape
    w1 = params['w1']
    cout = w1.shape[0]
    stride = params.get('stride', 1)
    # The reference module's residual add is only shape-consistent for stride == 1.
    assert stride == 1, "ConvBlock residual add requires stride == 1"

    w1f, b1f = _fold_bn(w1, params['bn1'])
    w2f, b2f = _fold_bn(params['w2'], params['bn2'])
    w1k = jnp.transpose(w1f, (2, 0, 1)).astype(jnp.float32)   # (3, Cout, Cin)
    w2k = jnp.transpose(w2f, (2, 0, 1)).astype(jnp.float32)   # (3, Cout, Cout)
    b1k = b1f.reshape(cout, 1).astype(jnp.float32)
    b2k = b2f.reshape(cout, 1).astype(jnp.float32)

    has_conv_skip = params.get('ws', None) is not None

    block_b = max(1, min(block_b, B))
    nb = (B + block_b - 1) // block_b
    Bp = nb * block_b
    xp = x if Bp == B else jnp.pad(x, ((0, Bp - B), (0, 0), (0, 0)))

    x_spec = pl.BlockSpec((block_b, cin, L), lambda b: (b, 0, 0))
    o_spec = pl.BlockSpec((block_b, cout, L), lambda b: (b, 0, 0))
    w1_spec = pl.BlockSpec((3, cout, cin), lambda b: (0, 0, 0))
    w2_spec = pl.BlockSpec((3, cout, cout), lambda b: (0, 0, 0))
    bias_spec = pl.BlockSpec((cout, 1), lambda b: (0, 0))
    out_shape = jax.ShapeDtypeStruct((Bp, cout, L), x.dtype)
    cparams = pltpu.CompilerParams(dimension_semantics=("parallel",))

    if has_conv_skip:
        wsf, bsf = _fold_bn(params['ws'], params['bns'])
        wsk = wsf[:, :, 0].astype(jnp.float32)                 # (Cout, Cin)
        bsk = bsf.reshape(cout, 1).astype(jnp.float32)
        ws_spec = pl.BlockSpec((cout, cin), lambda b: (0, 0))
        out = pl.pallas_call(
            convblock_kernel_conv_skip,
            out_shape=out_shape,
            grid_spec=pltpu.PrefetchScalarGridSpec(
                num_scalar_prefetch=0,
                grid=(nb,),
                in_specs=[x_spec, w1_spec, bias_spec, w2_spec, bias_spec,
                          ws_spec, bias_spec],
                out_specs=o_spec,
            ),
            compiler_params=cparams,
        )(xp, w1k, b1k, w2k, b2k, wsk, bsk)
    else:
        assert cin == cout, "identity skip requires in_channels == out_channels"
        out = pl.pallas_call(
            convblock_kernel_identity_skip,
            out_shape=out_shape,
            grid_spec=pltpu.PrefetchScalarGridSpec(
                num_scalar_prefetch=0,
                grid=(nb,),
                in_specs=[x_spec, w1_spec, bias_spec, w2_spec, bias_spec],
                out_specs=o_spec,
            ),
            compiler_params=cparams,
        )(xp, w1k, b1k, w2k, b2k)

    return out[:B]


# ---------------------------------- pure-JAX reference -------------------------------------

def _conv1d_ref(x, w, stride=1, padding=0):
    return lax.conv_general_dilated(
        x, w, window_strides=(stride,), padding=[(padding, padding)],
        dimension_numbers=('NCH', 'OIH', 'NCH'))


def _bn_ref(x, bn, eps=1e-5):
    s = bn['gamma'] * lax.rsqrt(bn['var'] + eps)
    return x * s[None, :, None] + (bn['beta'] - bn['mean'] * s)[None, :, None]


def convblock_ref(x, params):
    h = jnp.maximum(_bn_ref(_conv1d_ref(x, params['w1'], padding=1), params['bn1']), 0.0)
    y = _bn_ref(_conv1d_ref(h, params['w2'], padding=1), params['bn2'])
    if params.get('ws', None) is not None:
        ident = _bn_ref(_conv1d_ref(x, params['ws'], stride=params.get('stride', 1)),
                        params['bns'])
    else:
        ident = x
    return jnp.maximum(y + ident, 0.0)


# --------------------------------------- test setup ----------------------------------------

def _make_bn(key, c):
    k1, k2, k3, k4 = jax.random.split(key, 4)
    return {
        'gamma': 1.0 + 0.1 * jax.random.normal(k1, (c,), jnp.float32),
        'beta': 0.1 * jax.random.normal(k2, (c,), jnp.float32),
        'mean': 0.1 * jax.random.normal(k3, (c,), jnp.float32),
        'var': 0.5 + jax.random.uniform(k4, (c,), jnp.float32),
    }


def make_params(key, cin, cout, stride=1):
    k1, k2, k3, k4, k5, k6 = jax.random.split(key, 6)
    p = {
        'stride': stride,
        'w1': 0.3 * jax.random.normal(k1, (cout, cin, 3), jnp.float32),
        'bn1': _make_bn(k2, cout),
        'w2': 0.3 * jax.random.normal(k3, (cout, cout, 3), jnp.float32),
        'bn2': _make_bn(k4, cout),
        'ws': None,
    }
    if stride != 1 or cin != cout:
        p['ws'] = 0.3 * jax.random.normal(k5, (cout, cin, 1), jnp.float32)
        p['bns'] = _make_bn(k6, cout)
    return p


if __name__ == "__main__":
    key = jax.random.PRNGKey(0)
    cases = [
        # (B, C_in, C_out, L)
        (16, 4, 8, 128),   # conv(1x1)+BN skip path; lane-dense L, grid of 2 batch blocks
        (16, 8, 8, 128),   # identity skip path
        (11, 4, 8, 24),    # small / non-aligned shapes; exercises batch-block padding
    ]
    for i, (B, cin, cout, L) in enumerate(cases):
        kx, kp = jax.random.split(jax.random.fold_in(key, i))
        x = jax.random.normal(kx, (B, cin, L), jnp.float32)
        params = make_params(kp, cin, cout, stride=1)
        out = jax.block_until_ready(convblock_forward(x, params))
        ref = convblock_ref(x, params)
        assert out.shape == (B, cout, L), (out.shape, (B, cout, L))
        maxdiff = jnp.max(jnp.abs(out - ref))
        assert jnp.allclose(out, ref, atol=2e-4, rtol=2e-4), (
            f"mismatch in case {i}: max |diff| = {maxdiff}")
    print("KERNEL_OK")
</pallas_src>

<mosaic_0001>
module attributes {stable_mosaic.version = 11 : i64} {
  func.func @convblock_kernel_conv_skip(%arg0: i32, %arg1: memref<8x4x128xf32, #tpu.memory_space<vmem>>, %arg2: memref<3x8x4xf32, #tpu.memory_space<vmem>>, %arg3: memref<8x1xf32, #tpu.memory_space<vmem>>, %arg4: memref<3x8x8xf32, #tpu.memory_space<vmem>>, %arg5: memref<8x1xf32, #tpu.memory_space<vmem>>, %arg6: memref<8x4xf32, #tpu.memory_space<vmem>>, %arg7: memref<8x1xf32, #tpu.memory_space<vmem>>, %arg8: memref<8x8x128xf32, #tpu.memory_space<vmem>>) attributes {dimension_semantics = [#tpu.dimension_semantics<parallel>], iteration_bounds = array<i64: 2>, scalar_prefetch = 0 : i64, scratch_operands = 0 : i64, tpu.core_type = #tpu.core_type<tc>, window_params = [{transform_indices = @transform_0, window_bounds = array<i64: 8, 4, 128>}, {pipeline_mode = #tpu.pipeline_mode<synchronous>, transform_indices = @transform_1, window_bounds = array<i64: 3, 8, 4>}, {pipeline_mode = #tpu.pipeline_mode<synchronous>, transform_indices = @transform_2, window_bounds = array<i64: 8, 1>}, {pipeline_mode = #tpu.pipeline_mode<synchronous>, transform_indices = @transform_3, window_bounds = array<i64: 3, 8, 8>}, {pipeline_mode = #tpu.pipeline_mode<synchronous>, transform_indices = @transform_4, window_bounds = array<i64: 8, 1>}, {pipeline_mode = #tpu.pipeline_mode<synchronous>, transform_indices = @transform_5, window_bounds = array<i64: 8, 4>}, {pipeline_mode = #tpu.pipeline_mode<synchronous>, transform_indices = @transform_6, window_bounds = array<i64: 8, 1>}, {transform_indices = @transform_7, window_bounds = array<i64: 8, 8, 128>}]} {
    %c0 = arith.constant 0 : index
    %c0_0 = arith.constant 0 : index
    %c0_1 = arith.constant 0 : index
    %0 = vector.load %arg1[%c0, %c0_0, %c0_1] : memref<8x4x128xf32, #tpu.memory_space<vmem>>, vector<8x4x128xf32>
    %c0_2 = arith.constant 0 : index
    %c0_3 = arith.constant 0 : index
    %c0_4 = arith.constant 0 : index
    %1 = vector.load %arg2[%c0_2, %c0_3, %c0_4] : memref<3x8x4xf32, #tpu.memory_space<vmem>>, vector<1x8x4xf32>
    %2 = vector.shape_cast %1 : vector<1x8x4xf32> to vector<8x4xf32>
    %cst = arith.constant 0.000000e+00 : f32
    %3 = vector.broadcast %cst : f32 to vector<8x4x1xf32>
    %4 = vector.extract_strided_slice %0 {offsets = [0, 0, 0], sizes = [8, 4, 127], strides = [1, 1, 1]} : vector<8x4x128xf32> to vector<8x4x127xf32>
    %5 = tpu.concatenate %3, %4 in 2 : vector<8x4x1xf32>, vector<8x4x127xf32> -> vector<8x4x128xf32>
    %6 = vector.shape_cast %2 : vector<8x4xf32> to vector<1x8x4xf32>
    %7 = vector.shape_cast %6 : vector<1x8x4xf32> to vector<1x8x4xf32>
    %8 = vector.broadcast %7 : vector<1x8x4xf32> to vector<8x8x4xf32>
    "tpu.trace_start"() <{level = 10 : i32, message = "boc,bcl->bol"}> : () -> ()
    %cst_5 = arith.constant dense<0.000000e+00> : vector<8x8x128xf32>
    %9 = tpu.matmul %8, %5, %cst_5 {dimension_numbers = #tpu.dot_dimension_numbers<[2], [1], [1], [2], [0, 0, 0, 1, 1, 2], [0], [0]>} : vector<8x8x4xf32>, vector<8x4x128xf32>, vector<8x8x128xf32> -> vector<8x8x128xf32>
    "tpu.trace_stop"() : () -> ()
    %c1 = arith.constant 1 : index
    %c0_6 = arith.constant 0 : index
    %c0_7 = arith.constant 0 : index
    %10 = vector.load %arg2[%c1, %c0_6, %c0_7] : memref<3x8x4xf32, #tpu.memory_space<vmem>>, vector<1x8x4xf32>
    %11 = vector.shape_cast %10 : vector<1x8x4xf32> to vector<8x4xf32>
    %12 = vector.shape_cast %11 : vector<8x4xf32> to vector<1x8x4xf32>
    %13 = vector.shape_cast %12 : vector<1x8x4xf32> to vector<1x8x4xf32>
    %14 = vector.broadcast %13 : vector<1x8x4xf32> to vector<8x8x4xf32>
    "tpu.trace_start"() <{level = 10 : i32, message = "boc,bcl->bol"}> : () -> ()
    %cst_8 = arith.constant dense<0.000000e+00> : vector<8x8x128xf32>
    %15 = tpu.matmul %14, %0, %cst_8 {dimension_numbers = #tpu.dot_dimension_numbers<[2], [1], [1], [2], [0, 0, 0, 1, 1, 2], [0], [0]>} : vector<8x8x4xf32>, vector<8x4x128xf32>, vector<8x8x128xf32> -> vector<8x8x128xf32>
    "tpu.trace_stop"() : () -> ()
    %16 = arith.addf %9, %15 : vector<8x8x128xf32>
    %c2 = arith.constant 2 : index
    %c0_9 = arith.constant 0 : index
    %c0_10 = arith.constant 0 : index
    %17 = vector.load %arg2[%c2, %c0_9, %c0_10] : memref<3x8x4xf32, #tpu.memory_space<vmem>>, vector<1x8x4xf32>
    %18 = vector.shape_cast %17 : vector<1x8x4xf32> to vector<8x4xf32>
    %cst_11 = arith.constant 0.000000e+00 : f32
    %19 = vector.broadcast %cst_11 : f32 to vector<8x4x1xf32>
    %20 = vector.extract_strided_slice %0 {offsets = [0, 0, 1], sizes = [8, 4, 127], strides = [1, 1, 1]} : vector<8x4x128xf32> to vector<8x4x127xf32>
    %21 = tpu.concatenate %20, %19 in 2 : vector<8x4x127xf32>, vector<8x4x1xf32> -> vector<8x4x128xf32>
    %22 = vector.shape_cast %18 : vector<8x4xf32> to vector<1x8x4xf32>
    %23 = vector.shape_cast %22 : vector<1x8x4xf32> to vector<1x8x4xf32>
    %24 = vector.broadcast %23 : vector<1x8x4xf32> to vector<8x8x4xf32>
    "tpu.trace_start"() <{level = 10 : i32, message = "boc,bcl->bol"}> : () -> ()
    %cst_12 = arith.constant dense<0.000000e+00> : vector<8x8x128xf32>
    %25 = tpu.matmul %24, %21, %cst_12 {dimension_numbers = #tpu.dot_dimension_numbers<[2], [1], [1], [2], [0, 0, 0, 1, 1, 2], [0], [0]>} : vector<8x8x4xf32>, vector<8x4x128xf32>, vector<8x8x128xf32> -> vector<8x8x128xf32>
    "tpu.trace_stop"() : () -> ()
    %26 = arith.addf %16, %25 : vector<8x8x128xf32>
    %c0_13 = arith.constant 0 : index
    %c0_14 = arith.constant 0 : index
    %27 = vector.load %arg3[%c0_13, %c0_14] : memref<8x1xf32, #tpu.memory_space<vmem>>, vector<8x1xf32>
    %28 = vector.shape_cast %27 : vector<8x1xf32> to vector<1x8x1xf32>
    %29 = vector.broadcast %28 : vector<1x8x1xf32> to vector<8x8x128xf32>
    %30 = arith.addf %26, %29 : vector<8x8x128xf32>
    %cst_15 = arith.constant 0.000000e+00 : f32
    %31 = vector.broadcast %cst_15 : f32 to vector<8x8x128xf32>
    %32 = arith.maximumf %30, %31 : vector<8x8x128xf32>
    %c0_16 = arith.constant 0 : index
    %c0_17 = arith.constant 0 : index
    %c0_18 = arith.constant 0 : index
    %33 = vector.load %arg4[%c0_16, %c0_17, %c0_18] : memref<3x8x8xf32, #tpu.memory_space<vmem>>, vector<1x8x8xf32>
    %34 = vector.shape_cast %33 : vector<1x8x8xf32> to vector<8x8xf32>
    %cst_19 = arith.constant 0.000000e+00 : f32
    %35 = vector.broadcast %cst_19 : f32 to vector<8x8x1xf32>
    %36 = vector.extract_strided_slice %32 {offsets = [0, 0, 0], sizes = [8, 8, 127], strides = [1, 1, 1]} : vector<8x8x128xf32> to vector<8x8x127xf32>
    %37 = tpu.concatenate %35, %36 in 2 : vector<8x8x1xf32>, vector<8x8x127xf32> -> vector<8x8x128xf32>
    %38 = vector.shape_cast %34 : vector<8x8xf32> to vector<1x8x8xf32>
    %39 = vector.shape_cast %38 : vector<1x8x8xf32> to vector<1x8x8xf32>
    %40 = vector.broadcast %39 : vector<1x8x8xf32> to vector<8x8x8xf32>
    "tpu.trace_start"() <{level = 10 : i32, message = "boc,bcl->bol"}> : () -> ()
    %cst_20 = arith.constant dense<0.000000e+00> : vector<8x8x128xf32>
    %41 = tpu.matmul %40, %37, %cst_20 {dimension_numbers = #tpu.dot_dimension_numbers<[2], [1], [1], [2], [0, 0, 0, 1, 1, 2], [0], [0]>} : vector<8x8x8xf32>, vector<8x8x128xf32>, vector<8x8x128xf32> -> vector<8x8x128xf32>
    "tpu.trace_stop"() : () -> ()
    %c1_21 = arith.constant 1 : index
    %c0_22 = arith.constant 0 : index
    %c0_23 = arith.constant 0 : index
    %42 = vector.load %arg4[%c1_21, %c0_22, %c0_23] : memref<3x8x8xf32, #tpu.memory_space<vmem>>, vector<1x8x8xf32>
    %43 = vector.shape_cast %42 : vector<1x8x8xf32> to vector<8x8xf32>
    %44 = vector.shape_cast %43 : vector<8x8xf32> to vector<1x8x8xf32>
    %45 = vector.shape_cast %44 : vector<1x8x8xf32> to vector<1x8x8xf32>
    %46 = vector.broadcast %45 : vector<1x8x8xf32> to vector<8x8x8xf32>
    "tpu.trace_start"() <{level = 10 : i32, message = "boc,bcl->bol"}> : () -> ()
    %cst_24 = arith.constant dense<0.000000e+00> : vector<8x8x128xf32>
    %47 = tpu.matmul %46, %32, %cst_24 {dimension_numbers = #tpu.dot_dimension_numbers<[2], [1], [1], [2], [0, 0, 0, 1, 1, 2], [0], [0]>} : vector<8x8x8xf32>, vector<8x8x128xf32>, vector<8x8x128xf32> -> vector<8x8x128xf32>
    "tpu.trace_stop"() : () -> ()
    %48 = arith.addf %41, %47 : vector<8x8x128xf32>
    %c2_25 = arith.constant 2 : index
    %c0_26 = arith.constant 0 : index
    %c0_27 = arith.constant 0 : index
    %49 = vector.load %arg4[%c2_25, %c0_26, %c0_27] : memref<3x8x8xf32, #tpu.memory_space<vmem>>, vector<1x8x8xf32>
    %50 = vector.shape_cast %49 : vector<1x8x8xf32> to vector<8x8xf32>
    %cst_28 = arith.constant 0.000000e+00 : f32
    %51 = vector.broadcast %cst_28 : f32 to vector<8x8x1xf32>
    %52 = vector.extract_strided_slice %32 {offsets = [0, 0, 1], sizes = [8, 8, 127], strides = [1, 1, 1]} : vector<8x8x128xf32> to vector<8x8x127xf32>
    %53 = tpu.concatenate %52, %51 in 2 : vector<8x8x127xf32>, vector<8x8x1xf32> -> vector<8x8x128xf32>
    %54 = vector.shape_cast %50 : vector<8x8xf32> to vector<1x8x8xf32>
    %55 = vector.shape_cast %54 : vector<1x8x8xf32> to vector<1x8x8xf32>
    %56 = vector.broadcast %55 : vector<1x8x8xf32> to vector<8x8x8xf32>
    "tpu.trace_start"() <{level = 10 : i32, message = "boc,bcl->bol"}> : () -> ()
    %cst_29 = arith.constant dense<0.000000e+00> : vector<8x8x128xf32>
    %57 = tpu.matmul %56, %53, %cst_29 {dimension_numbers = #tpu.dot_dimension_numbers<[2], [1], [1], [2], [0, 0, 0, 1, 1, 2], [0], [0]>} : vector<8x8x8xf32>, vector<8x8x128xf32>, vector<8x8x128xf32> -> vector<8x8x128xf32>
    "tpu.trace_stop"() : () -> ()
    %58 = arith.addf %48, %57 : vector<8x8x128xf32>
    %c0_30 = arith.constant 0 : index
    %c0_31 = arith.constant 0 : index
    %59 = vector.load %arg5[%c0_30, %c0_31] : memref<8x1xf32, #tpu.memory_space<vmem>>, vector<8x1xf32>
    %60 = vector.shape_cast %59 : vector<8x1xf32> to vector<1x8x1xf32>
    %61 = vector.broadcast %60 : vector<1x8x1xf32> to vector<8x8x128xf32>
    %62 = arith.addf %58, %61 : vector<8x8x128xf32>
    %c0_32 = arith.constant 0 : index
    %c0_33 = arith.constant 0 : index
    %63 = vector.load %arg6[%c0_32, %c0_33] : memref<8x4xf32, #tpu.memory_space<vmem>>, vector<8x4xf32>
    %64 = vector.shape_cast %63 : vector<8x4xf32> to vector<1x8x4xf32>
    %65 = vector.shape_cast %64 : vector<1x8x4xf32> to vector<1x8x4xf32>
    %66 = vector.broadcast %65 : vector<1x8x4xf32> to vector<8x8x4xf32>
    "tpu.trace_start"() <{level = 10 : i32, message = "boc,bcl->bol"}> : () -> ()
    %cst_34 = arith.constant dense<0.000000e+00> : vector<8x8x128xf32>
    %67 = tpu.matmul %66, %0, %cst_34 {dimension_numbers = #tpu.dot_dimension_numbers<[2], [1], [1], [2], [0, 0, 0, 1, 1, 2], [0], [0]>} : vector<8x8x4xf32>, vector<8x4x128xf32>, vector<8x8x128xf32> -> vector<8x8x128xf32>
    "tpu.trace_stop"() : () -> ()
    %c0_35 = arith.constant 0 : index
    %c0_36 = arith.constant 0 : index
    %68 = vector.load %arg7[%c0_35, %c0_36] : memref<8x1xf32, #tpu.memory_space<vmem>>, vector<8x1xf32>
    %69 = vector.shape_cast %68 : vector<8x1xf32> to vector<1x8x1xf32>
    %70 = vector.broadcast %69 : vector<1x8x1xf32> to vector<8x8x128xf32>
    %71 = arith.addf %67, %70 : vector<8x8x128xf32>
    %72 = arith.addf %62, %71 : vector<8x8x128xf32>
    %cst_37 = arith.constant 0.000000e+00 : f32
    %73 = vector.broadcast %cst_37 : f32 to vector<8x8x128xf32>
    %74 = arith.maximumf %72, %73 : vector<8x8x128xf32>
    %c0_38 = arith.constant 0 : index
    %c0_39 = arith.constant 0 : index
    %c0_40 = arith.constant 0 : index
    %75 = vector.load %arg8[%c0_38, %c0_39, %c0_40] : memref<8x8x128xf32, #tpu.memory_space<vmem>>, vector<8x8x128xf32>
    tpu.vector_store %arg8[%c0_38, %c0_39, %c0_40], %74 {strides = array<i32>} : memref<8x8x128xf32, #tpu.memory_space<vmem>>, vector<8x8x128xf32>,
    return
  }
  func.func @transform_0(%arg0: i32) -> (i32, i32, i32) {
    %c0_i32 = arith.constant 0 : i32
    %c0_i32_0 = arith.constant 0 : i32
    %c0_i32_1 = arith.constant 0 : i32
    return %arg0, %c0_i32, %c0_i32_0 : i32, i32, i32
  }
  func.func @transform_1(%arg0: i32) -> (i32, i32, i32) {
    %c0_i32 = arith.constant 0 : i32
    %c0_i32_0 = arith.constant 0 : i32
    %c0_i32_1 = arith.constant 0 : i32
    %c0_i32_2 = arith.constant 0 : i32
    return %c0_i32, %c0_i32_0, %c0_i32_1 : i32, i32, i32
  }
  func.func @transform_2(%arg0: i32) -> (i32, i32) {
    %c0_i32 = arith.constant 0 : i32
    %c0_i32_0 = arith.constant 0 : i32
    %c0_i32_1 = arith.constant 0 : i32
    return %c0_i32, %c0_i32_0 : i32, i32
  }
  func.func @transform_3(%arg0: i32) -> (i32, i32, i32) {
    %c0_i32 = arith.constant 0 : i32
    %c0_i32_0 = arith.constant 0 : i32
    %c0_i32_1 = arith.constant 0 : i32
    %c0_i32_2 = arith.constant 0 : i32
    return %c0_i32, %c0_i32_0, %c0_i32_1 : i32, i32, i32
  }
  func.func @transform_4(%arg0: i32) -> (i32, i32) {
    %c0_i32 = arith.constant 0 : i32
    %c0_i32_0 = arith.constant 0 : i32
    %c0_i32_1 = arith.constant 0 : i32
    return %c0_i32, %c0_i32_0 : i32, i32
  }
  func.func @transform_5(%arg0: i32) -> (i32, i32) {
    %c0_i32 = arith.constant 0 : i32
    %c0_i32_0 = arith.constant 0 : i32
    %c0_i32_1 = arith.constant 0 : i32
    return %c0_i32, %c0_i32_0 : i32, i32
  }
  func.func @transform_6(%arg0: i32) -> (i32, i32) {
    %c0_i32 = arith.constant 0 : i32
    %c0_i32_0 = arith.constant 0 : i32
    %c0_i32_1 = arith.constant 0 : i32
    return %c0_i32, %c0_i32_0 : i32, i32
  }
  func.func @transform_7(%arg0: i32) -> (i32, i32, i32) {
    %c0_i32 = arith.constant 0 : i32
    %c0_i32_0 = arith.constant 0 : i32
    %c0_i32_1 = arith.constant 0 : i32
    return %arg0, %c0_i32, %c0_i32_0 : i32, i32, i32
  }
}

</mosaic_0001>

<bundles_post_ra>
// kernel: tpu_custom_call.1
= control target key start
LH: loop header
LB: loop body
LE: loop exit
PB: predicated region body
PF: predicated region fallthrough
CT: control target
= control target key end

     0   :  { %12 = vsyncpa [#allocation3], 0  ;;  %s5948_s0 = inlined_call_operand.vmem [shape: f32[16,4,128], index: 0, kind: input, shape index: {}]   ;;  %s5949_s1 = inlined_call_operand.vmem [shape: f32[3,8,4], index: 1, kind: input, shape index: {}]   ;;  %s5950_s2 = inlined_call_operand.vmem [shape: f32[8,1], index: 2, kind: input, shape index: {}]   ;;  %s5951_s3 = inlined_call_operand.hbm [shape: f32[3,8,8], index: 3, kind: input, shape index: {}]   ;;  %s5952_s4 = inlined_call_operand.vmem [shape: f32[8,1], index: 4, kind: input, shape index: {}]   ;;  %s5953_s5 = inlined_call_operand.vmem [shape: f32[8,4], index: 5, kind: input, shape index: {}]   ;;  %s5954_s6 = inlined_call_operand.vmem [shape: f32[8,1], index: 6, kind: input, shape index: {}]   ;;  %s5955_s7 = inlined_call_operand.hbm [shape: f32[16,8,128], index: 7, kind: output, shape index: {}]  }
   0x1   :  { %13 = vsyncpa [#allocation4], 0 }
   0x2   :  { %15 = vsyncpa [#allocation4 + $0x1], 0  ;;  %s5363_s24 = smov 0   ;;  %s5365_s25 = smov 0  }
   0x3   :  { %s5367_s26 = smov 0   ;;  %s5369_s27 = smov 0  }
   0x4 LB: > { %s5384_s28 = sadd.s32 4294967295, %s5310_s27   ;;  %s4638_s29 = sadd.s32 4294967294, %s5310_s27   ;;  %s5310_s27 = sphi %s5369_s27, %s5965_s27   ;;  %s5306_s26 = sphi %s5367_s26, %s5964_s26   ;;  %s5302_s25 = sphi %s5365_s25, %s5963_s25   ;;  %s5298_s24 = sphi %s5363_s24, %s5962_s24  }
   0x5   : > { %s5388_s30 = sadd.s32 1, %s5310_s27   ;;  %s180_s8 = sadd.s32 1, %s5306_s26 }
   0x6   : > { %s177_s9 = ssub.s32 %s5310_s27, %s5388_s30  ;;  %p190_p0 = scmp.ne.s32.totalorder %s5306_s26, %s5302_s25 }
   0x7   : > { %p178_p1 = scmp.eq.s32.totalorder %s177_s9, 0  ;;  %p191_p2 = scmp.eq.s32.totalorder %s5384_s28, 1 }
   0x8   : > { %p196_p3 = scmp.ne.s32.totalorder %s5302_s25, %s5298_s24  ;;  %p197_p4 = scmp.eq.s32.totalorder %s4638_s29, 1 }
   0x9   : > { %s5399_s10 = scalar_select %p178_p1, %s5306_s26, %s180_s8  }
   0xa   : > { %p5401_p5 = por %p191_p2, %p190_p0  ;;  %p5405_p6 = por %p197_p4, %p196_p3 }
   0xb   : > { %p4639_p7 = scmp.ge.s32.totalorder %s5310_s27, 1  ;;  %p204_p8 = scmp.lt.s32.totalorder %s5310_s27, 3 }
   0xc   : > { %s5957_s12 = scalar_select %p5405_p6, 1, 0 }
   0xd   : > { %p5173_p9 = scmp.eq.s32.totalorder %s5384_s28, 0  ;;  %p5412_p10 = pnand %p4639_p7, %p204_p8 }
   0xe   : > { %s5312_s14 = smov [#allocation2]  }
   0xf   : > { %s222_s15 = sshll.u32 %s5312_s14, 4  ;;  %p5165_p11 = pneg %p5412_p10  ;;  %s223_s15 = int_to_ptr.vmem [resolvable:$true] %s222_s15 }
  0x10   : > { %s5231_s16 = scalar_lea.vmem %s223_s15, 384  ;;  %p5239_p3 = scmp.lt.s32.totalorder %s223_s15, %s223_s15 }
  0x11   : > { %p5166_p12 = pnand %p5173_p9, %p5165_p11  ;;  %p5232_p0 = scmp.ne.s32.totalorder %s223_s15, %s5231_s16 }
  0x12   : > { %p5240_p4 = scmp.lt.s32.totalorder %s5231_s16, %s5231_s16 }
  0x13   : > { %p5222_p13 = pneg %p5166_p12 }
  0x14   : > { %p5241_p6 = por %p5240_p4, %p5239_p3 }
  0x15   : > { %p5234_p1 = pnand %p5232_p0, %p5222_p13 }
  0x17   : > { %p5235_p2 = pneg %p5234_p1 }
  0x19   : > { %p5242_p7 = pnand %p5241_p6, %p5235_p2 }
  0x1b   : > { %5245 = shalt.err (!%p5242_p7)
}
  0x1c   : > { %s5313_s17 = smov 128   ;;  %s5314_s18 = smov 8  }
  0x1d   : > { %5168 = dma.hbm_to_vmem [thread:$0]  (!%p5166_p12), %s5951_s3, 384, %s223_s15, [#allocation3], %s5313_s17, %s5313_s17, %s5314_s18  }
  0x1e   : > { %256 = sbr.rel (%p5412_p10) target bundleno = 752 (0x2f0), region = 48 }
  0x23   : > { %5289 = dma.done.wait (%p5173_p9), [#allocation3], 384  }
  0x24   : > { %5291 = vsyncadd (%p5173_p9), [#allocation3], 4294966912  ;;  %s4645_s21 = sshll.u32 %s5384_s28, 3  ;;  %v5315_v0 = vmov 0.0   ;;  %vm5316_vm0 = vmmov 0   ;;  %vm351_vm1 = vcmask 1043456  }
  0x25   : > { %p289_p8 = scmp.lt.s32.totalorder %s4645_s21, 15  ;;  %4879 = vmatprep.subr.mxu0 %v5315_v0  ;;  %4884 = vmatprep.subr.mxu1 %v5315_v0  ;;  %s5317_s9 = smov 1   ;;  %vm347_vm2 = vcmask 31744   ;;  %v4647_v5 = vld [vmem:[%s5949_s1 + $0x8] sm:$0xff]  ;;  %v5319_v10 = vmov 0   ;;  %v2145_v11 = vld [vmem:[%s5950_s2] sm:$0xff] }
  0x26   : > { %4881 = vmatprep.mubr.msk.f32.mxu0 %vm5316_vm0, %v5315_v0  ;;  %4886 = vmatprep.mubr.msk.f32.mxu1 %vm5316_vm0, %v5315_v0  ;;  %s5318_s15 = smov 127   ;;  %vm336_vm3 = vcmask 7168   ;;  %v303_v13 = vld [vmem:[%s5949_s1] sm:$0xff]  ;;  %vm1541_vm4 = vcmask 1039360   ;;  %v4680_v30 = vld [vmem:[%s5949_s1 + $0x10] sm:$0xff]  ;;  %vm2210_vm5 = vcmask 64512  }
  0x27   : > { %s5967_s21 = smov (!%p289_p8, %s4645_s21), 15  ;;  %5218 = vset.pattern.permute.xlu0 %v5319_v10  ;;  %5219 = vset.pattern.permute.xlu1 %v5319_v10  ;;  %vm5731_vm6 = vmneg %vm336_vm3  ;;  %s285_s14 = sand.u32 1, %s5302_s25  }
  0x28   : > { %s4646_s22 = sshll.u32 %s5967_s21, 2  ;;  %s4766_s18 = sshll.u32 %s5384_s28, 10 }
  0x29   : > { %s292_s8 = scalar_lea.vmem %s5948_s0, %s4646_s22  ;;  %s5903_s21 = scalar_lea.hbm %s5955_s7, %s4766_s18 }
  0x2a   : > { %v5439_v1 = vld [vmem:[%s292_s8] sm:$0xf]  ;;  %v5441_v2 = vld [vmem:[%s292_s8 + $0x8] sm:$0xf]  ;;  %v5447_v3 = vld [vmem:[%s292_s8 + $0x4] sm:$0xf] }
  0x2b   : > { %312 = vrot.lane.b32.xlu0 %v5439_v1, %s5317_s9  ;;  %316 = vrot.lane.b32.xlu1 %v5441_v2, %s5317_s9  ;;  %v5449_v4 = vld [vmem:[%s292_s8 + $0xc] sm:$0xf]  ;;  %v5466_v6 = vld [vmem:[%s292_s8 + $0x10] sm:$0xf]  ;;  %s5908_s22 = scalar_lea.sflag [#allocation4], %s285_s14  ;;  %s5320_s23 = smov [#allocation5]  }
  0x2c   : > { %4880 = vmatpush3.msk.msra.mxu0 %vm351_vm1, %v5439_v1  ;;  %4885 = vmatpush3.msk.msra.mxu1 %vm351_vm1, %v5447_v3  ;;  %v5468_v7 = vld [vmem:[%s292_s8 + $0x14] sm:$0xf]  ;;  %v5484_v8 = vld [vmem:[%s292_s8 + $0x18] sm:$0xf]  ;;  %v5486_v9 = vld [vmem:[%s292_s8 + $0x1c] sm:$0xf] }
  0x2d   : > { %4889 = vmatprep.subr.mxu0 %v5315_v0  ;;  %4894 = vmatprep.subr.mxu1 %v5315_v0  ;;  %s5250_s29 = sshll.u32 %s5320_s23, 4  ;;  %s5251_s29 = int_to_ptr.vmem [resolvable:$false] %s5250_s29 }
  0x2e   : > { %4882 = vmatmul.mubr.msk.f32.vlgmr.msra.gmra.mxu0 %vm347_vm2, %v4647_v5  ;;  %4887 = vmatmul.mubr.msk.f32.vlgmr.msra.gmra.mxu1 %vm347_vm2, %v4647_v5  ;;  %s5252_s8 = scalar_lea.vmem %s5251_s29, 2048 }
  0x2f   : > { %314 = vrot.lane.b32.xlu0 %v5447_v3, %s5317_s9  ;;  %318 = vrot.lane.b32.xlu1 %v5449_v4, %s5317_s9 }
  0x30   : > { %4890 = vmatpush3.msk.msra.mxu0 %vm351_vm1, %v5441_v2  ;;  %4891 = vmatprep.mubr.msk.f32.mxu0 %vm5316_vm0, %v5315_v0 }
  0x31   : > { %4899 = vmatprep.subr.mxu0 %v5315_v0  ;;  %4895 = vmatpush3.msk.msra.mxu1 %vm351_vm1, %v5449_v4 }
  0x32   : > { %4892 = vmatmul.mubr.msk.f32.vlgmr.msra.gmra.mxu0 %vm347_vm2, %v4647_v5  ;;  %4896 = vmatprep.mubr.msk.f32.mxu1 %vm5316_vm0, %v5315_v0 }
  0x33   : > { %320 = vrot.lane.b32.xlu0 %v5466_v6, %s5317_s9  ;;  %322 = vrot.lane.b32.xlu1 %v5468_v7, %s5317_s9 }
  0x34   : > { %4900 = vmatpush3.msk.msra.mxu0 %vm351_vm1, %v5466_v6  ;;  %4901 = vmatprep.mubr.msk.f32.mxu0 %vm5316_vm0, %v5315_v0 }
  0x35   : > { %4897 = vmatmul.mubr.msk.f32.vlgmr.msra.gmra.mxu1 %vm347_vm2, %v4647_v5  ;;  %4904 = vmatprep.subr.mxu1 %v5315_v0 }
  0x36   : > { %4902 = vmatmul.mubr.msk.f32.vlgmr.msra.gmra.mxu0 %vm347_vm2, %v4647_v5  ;;  %4909 = vmatprep.subr.mxu0 %v5315_v0 }
  0x37   : > { %324 = vrot.lane.b32.xlu0 %v5484_v8, %s5317_s9  ;;  %326 = vrot.lane.b32.xlu1 %v5486_v9, %s5317_s9 }
  0x38   : > { %4905 = vmatpush3.msk.msra.mxu1 %vm351_vm1, %v5468_v7  ;;  %4906 = vmatprep.mubr.msk.f32.mxu1 %vm5316_vm0, %v5315_v0 }
  0x39   : > { %4910 = vmatpush3.msk.msra.mxu0 %vm351_vm1, %v5484_v8  ;;  %4911 = vmatprep.mubr.msk.f32.mxu0 %vm5316_vm0, %v5315_v0 }
  0x3a   : > { %4907 = vmatmul.mubr.msk.f32.vlgmr.msra.gmra.mxu1 %vm347_vm2, %v4647_v5  ;;  %4912 = vmatmul.mubr.msk.f32.vlgmr.msra.gmra.mxu0 %vm347_vm2, %v4647_v5 }
  0x3b   : > { %1517 = vrot.lane.b32.xlu0 %v5439_v1, %s5318_s15  ;;  %1519 = vrot.lane.b32.xlu1 %v5447_v3, %s5318_s15 }
  0x3c   : > { %4914 = vmatprep.subr.mxu1 %v5315_v0  ;;  %4916 = vmatprep.mubr.msk.f32.mxu1 %vm5316_vm0, %v5315_v0 }
  0x3d   : > { %4915 = vmatpush3.msk.msra.mxu1 %vm351_vm1, %v5486_v9  ;;  %4919 = vmatprep.subr.mxu0 %v5315_v0 }
  0x3e   : > { %4917 = vmatmul.mubr.msk.f32.vlgmr.msra.gmra.mxu1 %vm347_vm2, %v4647_v5  ;;  %4921 = vmatprep.mubr.msk.f32.mxu0 %vm5316_vm0, %v5315_v0 }
  0x3f   : > { %1521 = vrot.lane.b32.xlu0 %v5441_v2, %s5318_s15  ;;  %1523 = vrot.lane.b32.xlu1 %v5449_v4, %s5318_s15 }
  0x40   : > { %4924 = vmatprep.subr.mxu1 %v5315_v0  ;;  %4926 = vmatprep.mubr.msk.f32.mxu1 %vm5316_vm0, %v5315_v0 }
  0x43   : > { %1525 = vrot.lane.b32.xlu0 %v5466_v6, %s5318_s15  ;;  %1527 = vrot.lane.b32.xlu1 %v5468_v7, %s5318_s15 }
  0x47   : > { %1529 = vrot.lane.b32.xlu0 %v5484_v8, %s5318_s15  ;;  %1531 = vrot.lane.b32.xlu1 %v5486_v9, %s5318_s15 }
  0x4b   : > { %2148 = vperm.xlu0 %5218, %v2145_v11  }
  0x9d   : > { %v313_v12 = vpop.permute.xlu0 %312  ;;  %v317_v14 = vpop.permute.xlu1 %316 }
  0x9e   : > { %v337_v15 = vsel %vm336_vm3, 0.0, %v313_v12  ;;  %v339_v16 = vsel %vm336_vm3, 0.0, %v317_v14 }
  0x9f   : > { %4920 = vmatpush3.msk.msra.mxu0 %vm351_vm1, %v337_v15 }
  0xa0   : > { %4922 = vmatmul.mubr.msk.f32.vlgmr.msra.gmra.mxu0 %vm347_vm2, %v303_v13  ;;  %4929 = vmatprep.subr.mxu0 %v5315_v0 }
  0xa1   : > { %v315_v17 = vpop.permute.xlu0 %314  ;;  %4930 = vmatpush3.msk.msra.mxu0 %vm351_vm1, %v339_v16  ;;  %4931 = vmatprep.mubr.msk.f32.mxu0 %vm5316_vm0, %v5315_v0  ;;  %v319_v18 = vpop.permute.xlu1 %318 }
  0xa2   : > { %v338_v19 = vsel %vm336_vm3, 0.0, %v315_v17  ;;  %4939 = vmatprep.subr.mxu0 %v5315_v0  ;;  %v340_v20 = vsel %vm336_vm3, 0.0, %v319_v18 }
  0xa3   : > { %4925 = vmatpush3.msk.msra.mxu1 %vm351_vm1, %v338_v19 }
  0xa4   : > { %4927 = vmatmul.mubr.msk.f32.vlgmr.msra.gmra.mxu1 %vm347_vm2, %v303_v13  ;;  %4932 = vmatmul.mubr.msk.f32.vlgmr.msra.gmra.mxu0 %vm347_vm2, %v303_v13 }
  0xa5   : > { %v321_v21 = vpop.permute.xlu0 %320  ;;  %4934 = vmatprep.subr.mxu1 %v5315_v0  ;;  %4936 = vmatprep.mubr.msk.f32.mxu1 %vm5316_vm0, %v5315_v0  ;;  %v323_v22 = vpop.permute.xlu1 %322 }
  0xa6   : > { %v341_v23 = vsel %vm336_vm3, 0.0, %v321_v21  ;;  %4935 = vmatpush3.msk.msra.mxu1 %vm351_vm1, %v340_v20  ;;  %4941 = vmatprep.mubr.msk.f32.mxu0 %vm5316_vm0, %v5315_v0  ;;  %v342_v24 = vsel %vm336_vm3, 0.0, %v323_v22 }
  0xa7   : > { %4940 = vmatpush3.msk.msra.mxu0 %vm351_vm1, %v341_v23  ;;  %4944 = vmatprep.subr.mxu1 %v5315_v0 }
  0xa8   : > { %4937 = vmatmul.mubr.msk.f32.vlgmr.msra.gmra.mxu1 %vm347_vm2, %v303_v13  ;;  %4942 = vmatmul.mubr.msk.f32.vlgmr.msra.gmra.mxu0 %vm347_vm2, %v303_v13 }
  0xa9   : > { %v325_v25 = vpop.permute.xlu0 %324  ;;  %4949 = vmatprep.subr.mxu0 %v5315_v0  ;;  %4945 = vmatpush3.msk.msra.mxu1 %vm351_vm1, %v342_v24  ;;  %v327_v26 = vpop.permute.xlu1 %326 }
  0xaa   : > { %v343_v27 = vsel %vm336_vm3, 0.0, %v325_v25  ;;  %4946 = vmatprep.mubr.msk.f32.mxu1 %vm5316_vm0, %v5315_v0  ;;  %4951 = vmatprep.mubr.msk.f32.mxu0 %vm5316_vm0, %v5315_v0  ;;  %v344_v28 = vsel %vm336_vm3, 0.0, %v327_v26 }
  0xab   : > { %4950 = vmatpush3.msk.msra.mxu0 %vm351_vm1, %v343_v27  ;;  %4954 = vmatprep.subr.mxu1 %v5315_v0 }
  0xac   : > { %4947 = vmatmul.mubr.msk.f32.vlgmr.msra.gmra.mxu1 %vm347_vm2, %v303_v13  ;;  %4952 = vmatmul.mubr.msk.f32.vlgmr.msra.gmra.mxu0 %vm347_vm2, %v303_v13 }
  0xad   : > { %v1518_v29 = vpop.permute.xlu0 %1517  ;;  %4959 = vmatprep.subr.mxu0 %v5315_v0  ;;  %4955 = vmatpush3.msk.msra.mxu1 %vm351_vm1, %v344_v28  ;;  %v1520_v31 = vpop.permute.xlu1 %1519 }
  0xae   : > { %v1542_v32 = vsel %vm1541_vm4, %v1518_v29, 0.0  ;;  %4956 = vmatprep.mubr.msk.f32.mxu1 %vm5316_vm0, %v5315_v0  ;;  %4961 = vmatprep.mubr.msk.f32.mxu0 %vm5316_vm0, %v5315_v0  ;;  %v1543_v33 = vsel %vm1541_vm4, %v1520_v31, 0.0 }
  0xaf   : > { %4960 = vmatpush3.msk.msra.mxu0 %vm351_vm1, %v1542_v32  ;;  %4964 = vmatprep.subr.mxu1 %v5315_v0 }
  0xb0   : > { %4957 = vmatmul.mubr.msk.f32.vlgmr.msra.gmra.mxu1 %vm347_vm2, %v303_v13  ;;  %4962 = vmatmul.mubr.msk.f32.vlgmr.msra.gmra.mxu0 %vm347_vm2, %v4680_v30 }
  0xb1   : > { %v1522_v34 = vpop.permute.xlu0 %1521  ;;  %4969 = vmatprep.subr.mxu0 %v5315_v0  ;;  %4965 = vmatpush3.msk.msra.mxu1 %vm351_vm1, %v1543_v33  ;;  %v1524_v35 = vpop.permute.xlu1 %1523 }
  0xb2   : > { %v1544_v36 = vsel %vm1541_vm4, %v1522_v34, 0.0  ;;  %4966 = vmatprep.mubr.msk.f32.mxu1 %vm5316_vm0, %v5315_v0  ;;  %4971 = vmatprep.mubr.msk.f32.mxu0 %vm5316_vm0, %v5315_v0  ;;  %v1545_v37 = vsel %vm1541_vm4, %v1524_v35, 0.0 }
  0xb3   : > { %4970 = vmatpush3.msk.msra.mxu0 %vm351_vm1, %v1544_v36  ;;  %4974 = vmatprep.subr.mxu1 %v5315_v0  ;;  %v5650_v36 = vld [vmem:[#allocation2 + $0x8] sm:$0xff] }
  0xb4   : > { %4967 = vmatmul.mubr.msk.f32.vlgmr.msra.gmra.mxu1 %vm347_vm2, %v4680_v30  ;;  %4972 = vmatmul.mubr.msk.f32.vlgmr.msra.gmra.mxu0 %vm347_vm2, %v4680_v30 }
  0xb5   : > { %v1526_v38 = vpop.permute.xlu0 %1525  ;;  %4979 = vmatprep.subr.mxu0 %v5315_v0  ;;  %4975 = vmatpush3.msk.msra.mxu1 %vm351_vm1, %v1545_v37  ;;  %v1528_v39 = vpop.permute.xlu1 %1527 }
  0xb6   : > { %v1546_v40 = vsel %vm1541_vm4, %v1526_v38, 0.0  ;;  %4976 = vmatprep.mubr.msk.f32.mxu1 %vm5316_vm0, %v5315_v0  ;;  %4981 = vmatprep.mubr.msk.f32.mxu0 %vm5316_vm0, %v5315_v0  ;;  %v1547_v41 = vsel %vm1541_vm4, %v1528_v39, 0.0 }
  0xb7   : > { %4980 = vmatpush3.msk.msra.mxu0 %vm351_vm1, %v1546_v40  ;;  %4984 = vmatprep.subr.mxu1 %v5315_v0 }
  0xb8   : > { %4977 = vmatmul.mubr.msk.f32.vlgmr.msra.gmra.mxu1 %vm347_vm2, %v4680_v30  ;;  %4982 = vmatmul.mubr.msk.f32.vlgmr.msra.gmra.mxu0 %vm347_vm2, %v4680_v30 }
  0xb9   : > { %v1530_v42 = vpop.permute.xlu0 %1529  ;;  %4989 = vmatprep.subr.mxu0 %v5315_v0  ;;  %4985 = vmatpush3.msk.msra.mxu1 %vm351_vm1, %v1547_v41  ;;  %v1532_v43 = vpop.permute.xlu1 %1531 }
  0xba   : > { %v1548_v44 = vsel %vm1541_vm4, %v1530_v42, 0.0  ;;  %4986 = vmatprep.mubr.msk.f32.mxu1 %vm5316_vm0, %v5315_v0  ;;  %4991 = vmatprep.mubr.msk.f32.mxu0 %vm5316_vm0, %v5315_v0  ;;  %v1549_v45 = vsel %vm1541_vm4, %v1532_v43, 0.0 }
  0xbb   : > { %4990 = vmatpush3.msk.msra.mxu0 %vm351_vm1, %v1548_v44  ;;  %4994 = vmatprep.subr.mxu1 %v5315_v0 }
  0xbc   : > { %4987 = vmatmul.mubr.msk.f32.vlgmr.msra.gmra.mxu1 %vm347_vm2, %v4680_v30  ;;  %4992 = vmatmul.mubr.msk.f32.vlgmr.msra.gmra.mxu0 %vm347_vm2, %v4680_v30 }
  0xbd   : > { %4995 = vmatpush3.msk.msra.mxu1 %vm351_vm1, %v1549_v45  ;;  %4996 = vmatprep.mubr.msk.f32.mxu1 %vm5316_vm0, %v5315_v0 }
  0xbe   : > { %4999 = vmatprep.subr.mxu0 %v5315_v0  ;;  %5001 = vmatprep.mubr.msk.f32.mxu0 %vm5316_vm0, %v5315_v0 }
  0xbf   : > { %5004 = vmatprep.subr.mxu1 %v5315_v0 }
  0xc0   : > { %4997 = vmatmul.mubr.msk.f32.vlgmr.msra.gmra.mxu1 %vm347_vm2, %v4680_v30 }
  0xc1   : > { %5006 = vmatprep.mubr.msk.f32.mxu1 %vm5316_vm0, %v5315_v0 }
  0xc6   : > { %v5645_v22 = vpop.permute.xlu0 %2148 }
  0xee   : > { %v420_v46 = vpop.f32.mrf.mxu0  ;;  %v492_v47 = vpop.f32.mrf.mxu1 }
  0xf0   : > { %v4883_v48 = vpop.f32.mrf.mxu0  ;;  %v4888_v49 = vpop.f32.mrf.mxu1 }
  0xf2   : > { %v564_v50 = vpop.f32.mrf.mxu0 }
  0xf4   : > { %v4893_v51 = vpop.f32.mrf.mxu0 }
  0xf5   : > { %v636_v52 = vpop.f32.mrf.mxu1 }
  0xf6   : > { %v708_v53 = vpop.f32.mrf.mxu0 }
  0xf7   : > { %v4898_v54 = vpop.f32.mrf.mxu1 }
  0xf8   : > { %v4903_v55 = vpop.f32.mrf.mxu0 }
  0xfa   : > { %v780_v56 = vpop.f32.mrf.mxu1  ;;  %v852_v57 = vpop.f32.mrf.mxu0 }
  0xfc   : > { %v4908_v58 = vpop.f32.mrf.mxu1  ;;  %v4913_v59 = vpop.f32.mrf.mxu0 }
  0xfe   : > { %v5643_v60 = vpop.f32.mrf.mxu1 }
 0x100   : > { %v4918_v61 = vpop.f32.mrf.mxu1 }
 0x160   : > { %v1000_v62 = vpop.f32.mrf.mxu0 }
 0x161   : > { %v1001_v21 = vadd.f32 %v1000_v62, %v420_v46 }
 0x162   : > { %v4923_v63 = vpop.f32.mrf.mxu0 }
 0x164   : > { %v1073_v5 = vpop.f32.mrf.mxu1  ;;  %v1146_v10 = vpop.f32.mrf.mxu0 }
 0x165   : > { %v1074_v28 = vadd.f32 %v1073_v5, %v492_v47  ;;  %v1147_v29 = vadd.f32 %v1146_v10, %v564_v50 }
 0x166   : > { %v4928_v11 = vpop.f32.mrf.mxu1  ;;  %v4933_v12 = vpop.f32.mrf.mxu0 }
 0x168   : > { %v1219_v13 = vpop.f32.mrf.mxu1  ;;  %v1292_v14 = vpop.f32.mrf.mxu0 }
 0x169   : > { %v1220_v37 = vadd.f32 %v1219_v13, %v636_v52  ;;  %v1293_v40 = vadd.f32 %v1292_v14, %v708_v53 }
 0x16a   : > { %v4938_v15 = vpop.f32.mrf.mxu1  ;;  %v4943_v16 = vpop.f32.mrf.mxu0 }
 0x16c   : > { %v1365_v17 = vpop.f32.mrf.mxu1  ;;  %v1438_v18 = vpop.f32.mrf.mxu0 }
 0x16d   : > { %v1366_v49 = vadd.f32 %v1365_v17, %v780_v56  ;;  %v1439_v52 = vadd.f32 %v1438_v18, %v852_v57  ;;  %v3942_v18 = vld [vmem:[%s5952_s4] sm:$0xff] }
 0x16e   : > { %v4948_v19 = vpop.f32.mrf.mxu1  ;;  %v4953_v20 = vpop.f32.mrf.mxu0 }
 0x16f   : > { %v3957_v19 = vld [vmem:[%s5954_s6] sm:$0xff] }
 0x170   : > { %v1511_v23 = vpop.f32.mrf.mxu1  ;;  %v1622_v24 = vpop.f32.mrf.mxu0 }
 0x171   : > { %v2137_v25 = vadd.f32 %v1622_v24, %v1001_v21  ;;  %v1512_v5 = vadd.f32 %v1511_v23, %v5643_v60  ;;  %v2167_v21 = vld [vmem:[#allocation2] sm:$0xff] }
 0x172   : > { %v4958_v26 = vpop.f32.mrf.mxu1  ;;  %v4963_v27 = vpop.f32.mrf.mxu0 }
 0x173   : > { %v2151_v30 = vadd.f32 %v5645_v22, %v2137_v25 }
 0x174   : > { %v1695_v31 = vpop.f32.mrf.mxu1  ;;  %v1768_v32 = vpop.f32.mrf.mxu0 }
 0x175   : > { %v2138_v33 = vadd.f32 %v1695_v31, %v1074_v28  ;;  %v2139_v34 = vadd.f32 %v1768_v32, %v1147_v29  ;;  %v5648_v35 = vmax.f32 %v2151_v30, 0.0  ;;  %v3338_v30 = vld [vmem:[#allocation2 + $0x10] sm:$0xff] }
 0x176   : > { %v4968_v38 = vpop.f32.mrf.mxu1  ;;  %v4973_v39 = vpop.f32.mrf.mxu0 }
 0x177   : > { %v2152_v41 = vadd.f32 %v5645_v22, %v2138_v33  ;;  %v2153_v42 = vadd.f32 %v5645_v22, %v2139_v34  ;;  %2176 = vrot.lane.b32.xlu1 %v5648_v35, %s5317_s9  ;;  %5000 = vmatpush3.msra.mxu0 %v5648_v35  ;;  %v3956_v39 = vld [vmem:[%s5953_s5] sm:$0xff] }
 0x178   : > { %v1841_v43 = vpop.f32.mrf.mxu1  ;;  %v1914_v44 = vpop.f32.mrf.mxu0  ;;  %5009 = vmatprep.subr.mxu0 %v5315_v0  ;;  %5002 = vmatmul.mubr.msk.f32.vlgmr.msra.gmra.mxu0 %vm2210_vm5, %v5650_v36 }
 0x179   : > { %v2160_v45 = vmax.f32 %v2152_v41, 0.0  ;;  %v5660_v46 = vmax.f32 %v2153_v42, 0.0  ;;  %v2140_v47 = vadd.f32 %v1841_v43, %v1220_v37  ;;  %v2141_v48 = vadd.f32 %v1914_v44, %v1293_v40  ;;  %5011 = vmatprep.mubr.msk.f32.mxu0 %vm5316_vm0, %v5315_v0 }
 0x17a   : > { %v4978_v50 = vpop.f32.mrf.mxu1  ;;  %v4983_v51 = vpop.f32.mrf.mxu0 }
 0x17b   : > { %v2154_v53 = vadd.f32 %v5645_v22, %v2140_v47  ;;  %v2155_v54 = vadd.f32 %v5645_v22, %v2141_v48  ;;  %5005 = vmatpush3.msra.mxu1 %v2160_v45  ;;  %2178 = vrot.lane.b32.xlu1 %v2160_v45, %s5317_s9 }
 0x17c   : > { %2180 = vrot.lane.b32.xlu0 %v5660_v46, %s5317_s9  ;;  %5010 = vmatpush3.msra.mxu0 %v5660_v46  ;;  %v1987_v55 = vpop.f32.mrf.mxu1  ;;  %v2060_v58 = vpop.f32.mrf.mxu0 }
 0x17d   : > { %v2162_v59 = vmax.f32 %v2154_v53, 0.0  ;;  %v2163_v61 = vmax.f32 %v2155_v54, 0.0  ;;  %v2142_v56 = vadd.f32 %v1987_v55, %v1366_v49  ;;  %v2143_v62 = vadd.f32 %v2060_v58, %v1439_v52  ;;  %5014 = vmatprep.subr.mxu1 %v5315_v0  ;;  %5019 = vmatprep.subr.mxu0 %v5315_v0 }
 0x17e   : > { %v4988_v57 = vpop.f32.mrf.mxu1  ;;  %5007 = vmatmul.mubr.msk.f32.vlgmr.msra.gmra.mxu1 %vm2210_vm5, %v5650_v36  ;;  %5012 = vmatmul.mubr.msk.f32.vlgmr.msra.gmra.mxu0 %vm2210_vm5, %v5650_v36  ;;  %v4993_v63 = vpop.f32.mrf.mxu0 }
 0x17f   : > { %v2156_v10 = vadd.f32 %v5645_v22, %v2142_v56  ;;  %v2157_v11 = vadd.f32 %v5645_v22, %v2143_v62  ;;  %5015 = vmatpush3.msra.mxu1 %v2162_v59  ;;  %2182 = vrot.lane.b32.xlu1 %v2162_v59, %s5317_s9 }
 0x180   : > { %2184 = vrot.lane.b32.xlu0 %v2163_v61, %s5317_s9  ;;  %5020 = vmatpush3.msra.mxu0 %v2163_v61  ;;  %v2133_v12 = vpop.f32.mrf.mxu1 }
 0x181   : > { %v2164_v13 = vmax.f32 %v2156_v10, 0.0  ;;  %v2165_v14 = vmax.f32 %v2157_v11, 0.0  ;;  %v2144_v15 = vadd.f32 %v2133_v12, %v1512_v5  ;;  %5016 = vmatprep.mubr.msk.f32.mxu1 %vm5316_vm0, %v5315_v0  ;;  %5021 = vmatprep.mubr.msk.f32.mxu0 %vm5316_vm0, %v5315_v0 }
 0x182   : > { %v4998_v60 = vpop.f32.mrf.mxu1  ;;  %5024 = vmatprep.subr.mxu1 %v5315_v0  ;;  %5029 = vmatprep.subr.mxu0 %v5315_v0 }
 0x183   : > { %v2158_v16 = vadd.f32 %v5645_v22, %v2144_v15  ;;  %5017 = vmatmul.mubr.msk.f32.vlgmr.msra.gmra.mxu1 %vm2210_vm5, %v5650_v36  ;;  %2186 = vrot.lane.b32.xlu1 %v2164_v13, %s5317_s9 }
 0x184   : > { %5025 = vmatpush3.msra.mxu1 %v2164_v13  ;;  %5022 = vmatmul.mubr.msk.f32.vlgmr.msra.gmra.mxu0 %vm2210_vm5, %v5650_v36 }
 0x185   : > { %v2166_v17 = vmax.f32 %v2158_v16, 0.0  ;;  %2188 = vrot.lane.b32.xlu0 %v2165_v14, %s5317_s9  ;;  %5030 = vmatpush3.msra.mxu0 %v2165_v14 }
 0x186   : > { %5026 = vmatprep.mubr.msk.f32.mxu1 %vm5316_vm0, %v5315_v0  ;;  %5034 = vmatprep.subr.mxu1 %v5315_v0 }
 0x187   : > { %5027 = vmatmul.mubr.msk.f32.vlgmr.msra.gmra.mxu1 %vm2210_vm5, %v5650_v36  ;;  %2190 = vrot.lane.b32.xlu1 %v2166_v17, %s5317_s9 }
 0x188   : > { %5035 = vmatpush3.msra.mxu1 %v2166_v17  ;;  %5031 = vmatprep.mubr.msk.f32.mxu0 %vm5316_vm0, %v5315_v0 }
 0x189   : > { %3339 = vrot.lane.b32.xlu0 %v5648_v35, %s5318_s15  ;;  %5032 = vmatmul.mubr.msk.f32.vlgmr.msra.gmra.mxu0 %vm2210_vm5, %v5650_v36 }
 0x18a   : > { %5039 = vmatprep.subr.mxu0 %v5315_v0  ;;  %5036 = vmatprep.mubr.msk.f32.mxu1 %vm5316_vm0, %v5315_v0 }
 0x18b   : > { %3341 = vrot.lane.b32.xlu1 %v2160_v45, %s5318_s15  ;;  %5041 = vmatprep.mubr.msk.f32.mxu0 %vm5316_vm0, %v5315_v0 }
 0x18c   : > { %5037 = vmatmul.mubr.msk.f32.vlgmr.msra.gmra.mxu1 %vm2210_vm5, %v5650_v36  ;;  %5044 = vmatprep.subr.mxu1 %v5315_v0 }
 0x18d   : > { %3343 = vrot.lane.b32.xlu0 %v5660_v46, %s5318_s15  ;;  %5046 = vmatprep.mubr.msk.f32.mxu1 %vm5316_vm0, %v5315_v0 }
 0x18f   : > { %3345 = vrot.lane.b32.xlu1 %v2162_v59, %s5318_s15 }
 0x191   : > { %3347 = vrot.lane.b32.xlu0 %v2163_v61, %s5318_s15 }
 0x193   : > { %3349 = vrot.lane.b32.xlu1 %v2164_v13, %s5318_s15 }
 0x195   : > { %3351 = vrot.lane.b32.xlu0 %v2165_v14, %s5318_s15 }
 0x197   : > { %3353 = vrot.lane.b32.xlu1 %v2166_v17, %s5318_s15  ;;  %s4644_s15 = sshll.u32 %s285_s14, 6 }
 0x198   : > { %s5881_s16 = scalar_lea.vmem [#allocation5], %s4644_s15 }
 0x199   : > { %3945 = vperm.xlu0 %5218, %v3942_v18   ;;  %s4564_s17 = sshll.u32 %s5881_s16, 4  ;;  %s5897_s17 = int_to_ptr.vmem [resolvable:$true] %s4564_s17 }
 0x19a   : > { %s5246_s28 = scalar_lea.vmem %s5897_s17, 1024  ;;  %p5253_p11 = scmp.lt.s32.totalorder %s5897_s17, %s5251_s29 }
 0x19b   : > { %3960 = vperm.xlu1 %5219, %v3957_v19   ;;  %p5247_p6 = scmp.ne.s32.totalorder %s5897_s17, %s5246_s28  ;;  %p5254_p12 = scmp.lt.s32.totalorder %s5252_s8, %s5246_s28 }
 0x19d   : > { %p5248_p9 = pnand %p5247_p6, %p5401_p5  ;;  %p5255_p13 = por %p5254_p12, %p5253_p11 }
 0x19f   : > { %p5249_p10 = pneg %p5248_p9 }
 0x1a1   : > { %p5256_p0 = pnand %p5255_p13, %p5249_p10 }
 0x1e9   : > { %v2177_v22 = vpop.permute.xlu1 %2176 }
 0x1ea   : > { %5040 = vmatpush3.msk.msra.mxu0 %vm5731_vm6, %v2177_v22 }
 0x1eb   : > { %5042 = vmatmul.mubr.msk.f32.vlgmr.msra.gmra.mxu0 %vm2210_vm5, %v2167_v21  ;;  %5049 = vmatprep.subr.mxu0 %v5315_v0 }
 0x1ec   : > { %5051 = vmatprep.mubr.msk.f32.mxu0 %vm5316_vm0, %v5315_v0 }
 0x1ed   : > { %v2179_v23 = vpop.permute.xlu1 %2178 }
 0x1ee   : > { %v2181_v24 = vpop.permute.xlu0 %2180  ;;  %5045 = vmatpush3.msk.msra.mxu1 %vm5731_vm6, %v2179_v23 }
 0x1ef   : > { %5050 = vmatpush3.msk.msra.mxu0 %vm5731_vm6, %v2181_v24  ;;  %5047 = vmatmul.mubr.msk.f32.vlgmr.msra.gmra.mxu1 %vm2210_vm5, %v2167_v21 }
 0x1f0   : > { %5052 = vmatmul.mubr.msk.f32.vlgmr.msra.gmra.mxu0 %vm2210_vm5, %v2167_v21  ;;  %5054 = vmatprep.subr.mxu1 %v5315_v0 }
 0x1f1   : > { %v2183_v25 = vpop.permute.xlu1 %2182  ;;  %5059 = vmatprep.subr.mxu0 %v5315_v0  ;;  %5056 = vmatprep.mubr.msk.f32.mxu1 %vm5316_vm0, %v5315_v0 }
 0x1f2   : > { %v2185_v26 = vpop.permute.xlu0 %2184  ;;  %5055 = vmatpush3.msk.msra.mxu1 %vm5731_vm6, %v2183_v25  ;;  %5061 = vmatprep.mubr.msk.f32.mxu0 %vm5316_vm0, %v5315_v0 }
 0x1f3   : > { %5060 = vmatpush3.msk.msra.mxu0 %vm5731_vm6, %v2185_v26  ;;  %5057 = vmatmul.mubr.msk.f32.vlgmr.msra.gmra.mxu1 %vm2210_vm5, %v2167_v21 }
 0x1f4   : > { %5062 = vmatmul.mubr.msk.f32.vlgmr.msra.gmra.mxu0 %vm2210_vm5, %v2167_v21  ;;  %5064 = vmatprep.subr.mxu1 %v5315_v0 }
 0x1f5   : > { %v2187_v27 = vpop.permute.xlu1 %2186  ;;  %5069 = vmatprep.subr.mxu0 %v5315_v0  ;;  %5066 = vmatprep.mubr.msk.f32.mxu1 %vm5316_vm0, %v5315_v0 }
 0x1f6   : > { %5065 = vmatpush3.msk.msra.mxu1 %vm5731_vm6, %v2187_v27  ;;  %5071 = vmatprep.mubr.msk.f32.mxu0 %vm5316_vm0, %v5315_v0 }
 0x1f7   : > { %v2189_v28 = vpop.permute.xlu0 %2188  ;;  %5067 = vmatmul.mubr.msk.f32.vlgmr.msra.gmra.mxu1 %vm2210_vm5, %v2167_v21  ;;  %5074 = vmatprep.subr.mxu1 %v5315_v0 }
 0x1f8   : > { %5070 = vmatpush3.msk.msra.mxu0 %vm5731_vm6, %v2189_v28  ;;  %5076 = vmatprep.mubr.msk.f32.mxu1 %vm5316_vm0, %v5315_v0 }
 0x1f9   : > { %5072 = vmatmul.mubr.msk.f32.vlgmr.msra.gmra.mxu0 %vm2210_vm5, %v2167_v21  ;;  %v2191_v29 = vpop.permute.xlu1 %2190  ;;  %5079 = vmatprep.subr.mxu0 %v5315_v0 }
 0x1fa   : > { %5075 = vmatpush3.msk.msra.mxu1 %vm5731_vm6, %v2191_v29  ;;  %5081 = vmatprep.mubr.msk.f32.mxu0 %vm5316_vm0, %v5315_v0 }
 0x1fb   : > { %v3340_v31 = vpop.permute.xlu0 %3339  ;;  %5077 = vmatmul.mubr.msk.f32.vlgmr.msra.gmra.mxu1 %vm2210_vm5, %v2167_v21  ;;  %5084 = vmatprep.subr.mxu1 %v5315_v0 }
 0x1fc   : > { %5080 = vmatpush3.msk.msra.mxu0 %vm1541_vm4, %v3340_v31  ;;  %5086 = vmatprep.mubr.msk.f32.mxu1 %vm5316_vm0, %v5315_v0 }
 0x1fd   : > { %5082 = vmatmul.mubr.msk.f32.vlgmr.msra.gmra.mxu0 %vm2210_vm5, %v3338_v30  ;;  %v3342_v32 = vpop.permute.xlu1 %3341  ;;  %5089 = vmatprep.subr.mxu0 %v5315_v0 }
 0x1fe   : > { %5085 = vmatpush3.msk.msra.mxu1 %vm1541_vm4, %v3342_v32  ;;  %5091 = vmatprep.mubr.msk.f32.mxu0 %vm5316_vm0, %v5315_v0 }
 0x1ff   : > { %v3344_v33 = vpop.permute.xlu0 %3343  ;;  %5087 = vmatmul.mubr.msk.f32.vlgmr.msra.gmra.mxu1 %vm2210_vm5, %v3338_v30  ;;  %5094 = vmatprep.subr.mxu1 %v5315_v0 }
 0x200   : > { %5090 = vmatpush3.msk.msra.mxu0 %vm1541_vm4, %v3344_v33  ;;  %5096 = vmatprep.mubr.msk.f32.mxu1 %vm5316_vm0, %v5315_v0 }
 0x201   : > { %5092 = vmatmul.mubr.msk.f32.vlgmr.msra.gmra.mxu0 %vm2210_vm5, %v3338_v30  ;;  %v3346_v34 = vpop.permute.xlu1 %3345  ;;  %5099 = vmatprep.subr.mxu0 %v5315_v0 }
 0x202   : > { %5095 = vmatpush3.msk.msra.mxu1 %vm1541_vm4, %v3346_v34  ;;  %5101 = vmatprep.mubr.msk.f32.mxu0 %vm5316_vm0, %v5315_v0 }
 0x203   : > { %v3348_v35 = vpop.permute.xlu0 %3347  ;;  %5097 = vmatmul.mubr.msk.f32.vlgmr.msra.gmra.mxu1 %vm2210_vm5, %v3338_v30  ;;  %5104 = vmatprep.subr.mxu1 %v5315_v0 }
 0x204   : > { %5100 = vmatpush3.msk.msra.mxu0 %vm1541_vm4, %v3348_v35  ;;  %5106 = vmatprep.mubr.msk.f32.mxu1 %vm5316_vm0, %v5315_v0 }
 0x205   : > { %5102 = vmatmul.mubr.msk.f32.vlgmr.msra.gmra.mxu0 %vm2210_vm5, %v3338_v30  ;;  %v3350_v36 = vpop.permute.xlu1 %3349  ;;  %5109 = vmatprep.subr.mxu0 %v5315_v0 }
 0x206   : > { %5105 = vmatpush3.msk.msra.mxu1 %vm1541_vm4, %v3350_v36  ;;  %5111 = vmatprep.mubr.msk.f32.mxu0 %vm5316_vm0, %v5315_v0 }
 0x207   : > { %v3352_v37 = vpop.permute.xlu0 %3351  ;;  %5107 = vmatmul.mubr.msk.f32.vlgmr.msra.gmra.mxu1 %vm2210_vm5, %v3338_v30  ;;  %5114 = vmatprep.subr.mxu1 %v5315_v0 }
 0x208   : > { %5110 = vmatpush3.msk.msra.mxu0 %vm1541_vm4, %v3352_v37  ;;  %5116 = vmatprep.mubr.msk.f32.mxu1 %vm5316_vm0, %v5315_v0 }
 0x209   : > { %5112 = vmatmul.mubr.msk.f32.vlgmr.msra.gmra.mxu0 %vm2210_vm5, %v3338_v30  ;;  %v3354_v38 = vpop.permute.xlu1 %3353  ;;  %5119 = vmatprep.subr.mxu0 %v5315_v0 }
 0x20a   : > { %5115 = vmatpush3.msk.msra.mxu1 %vm1541_vm4, %v3354_v38  ;;  %5120 = vmatpush3.msk.msra.mxu0 %vm351_vm1, %v5439_v1 }
 0x20b   : > { %5121 = vmatprep.mubr.msk.f32.mxu0 %vm5316_vm0, %v5315_v0  ;;  %5117 = vmatmul.mubr.msk.f32.vlgmr.msra.gmra.mxu1 %vm2210_vm5, %v3338_v30 }
 0x20c   : > { %5124 = vmatprep.subr.mxu1 %v5315_v0  ;;  %5129 = vmatprep.subr.mxu0 %v5315_v0 }
 0x20d   : > { %5122 = vmatmul.mubr.msk.f32.vlgmr.msra.gmra.mxu0 %vm347_vm2, %v3956_v39  ;;  %5125 = vmatpush3.msk.msra.mxu1 %vm351_vm1, %v5447_v3 }
 0x20e   : > { %5126 = vmatprep.mubr.msk.f32.mxu1 %vm5316_vm0, %v5315_v0  ;;  %5130 = vmatpush3.msk.msra.mxu0 %vm351_vm1, %v5441_v2 }
 0x20f   : > { %5131 = vmatprep.mubr.msk.f32.mxu0 %vm5316_vm0, %v5315_v0  ;;  %5127 = vmatmul.mubr.msk.f32.vlgmr.msra.gmra.mxu1 %vm347_vm2, %v3956_v39 }
 0x210   : > { %5134 = vmatprep.subr.mxu1 %v5315_v0  ;;  %5139 = vmatprep.subr.mxu0 %v5315_v0 }
 0x211   : > { %5132 = vmatmul.mubr.msk.f32.vlgmr.msra.gmra.mxu0 %vm347_vm2, %v3956_v39  ;;  %5135 = vmatpush3.msk.msra.mxu1 %vm351_vm1, %v5449_v4 }
 0x212   : > { %5136 = vmatprep.mubr.msk.f32.mxu1 %vm5316_vm0, %v5315_v0  ;;  %5140 = vmatpush3.msk.msra.mxu0 %vm351_vm1, %v5466_v6 }
 0x213   : > { %5141 = vmatprep.mubr.msk.f32.mxu0 %vm5316_vm0, %v5315_v0  ;;  %5137 = vmatmul.mubr.msk.f32.vlgmr.msra.gmra.mxu1 %vm347_vm2, %v3956_v39 }
 0x214   : > { %5144 = vmatprep.subr.mxu1 %v5315_v0  ;;  %5149 = vmatprep.subr.mxu0 %v5315_v0  ;;  %v3946_v27 = vpop.permute.xlu0 %3945 }
 0x215   : > { %5142 = vmatmul.mubr.msk.f32.vlgmr.msra.gmra.mxu0 %vm347_vm2, %v3956_v39  ;;  %5145 = vmatpush3.msk.msra.mxu1 %vm351_vm1, %v5468_v7 }
 0x216   : > { %5146 = vmatprep.mubr.msk.f32.mxu1 %vm5316_vm0, %v5315_v0  ;;  %5150 = vmatpush3.msk.msra.mxu0 %vm351_vm1, %v5484_v8  ;;  %v5872_v24 = vpop.permute.xlu1 %3960 }
 0x217   : > { %5151 = vmatprep.mubr.msk.f32.mxu0 %vm5316_vm0, %v5315_v0  ;;  %5147 = vmatmul.mubr.msk.f32.vlgmr.msra.gmra.mxu1 %vm347_vm2, %v3956_v39 }
 0x218   : > { %5154 = vmatprep.subr.mxu1 %v5315_v0  ;;  %5156 = vmatprep.mubr.msk.f32.mxu1 %vm5316_vm0, %v5315_v0 }
 0x219   : > { %5152 = vmatmul.mubr.msk.f32.vlgmr.msra.gmra.mxu0 %vm347_vm2, %v3956_v39  ;;  %5155 = vmatpush3.msk.msra.mxu1 %vm351_vm1, %v5486_v9 }
 0x21b   : > { %5157 = vmatmul.mubr.msk.f32.vlgmr.msra.gmra.mxu1 %vm347_vm2, %v3956_v39 }
 0x238   : > { %v2280_v1 = vpop.f32.mrf.mxu0 }
 0x23a   : > { %v5003_v2 = vpop.f32.mrf.mxu0 }
 0x23e   : > { %v2350_v3 = vpop.f32.mrf.mxu1  ;;  %v2420_v4 = vpop.f32.mrf.mxu0 }
 0x240   : > { %v5008_v6 = vpop.f32.mrf.mxu1  ;;  %v5013_v7 = vpop.f32.mrf.mxu0 }
 0x243   : > { %v2490_v8 = vpop.f32.mrf.mxu1 }
 0x244   : > { %v2560_v40 = vpop.f32.mrf.mxu0 }
 0x245   : > { %v5018_v41 = vpop.f32.mrf.mxu1 }
 0x246   : > { %v5023_v42 = vpop.f32.mrf.mxu0 }
 0x247   : > { %v2630_v43 = vpop.f32.mrf.mxu1 }
 0x249   : > { %v5868_v44 = vpop.f32.mrf.mxu0  ;;  %v5028_v0 = vpop.f32.mrf.mxu1 }
 0x24b   : > { %v5033_v45 = vpop.f32.mrf.mxu0 }
 0x24c   : > { %v5870_v46 = vpop.f32.mrf.mxu1 }
 0x24e   : > { %v5038_v9 = vpop.f32.mrf.mxu1 }
 0x2ab   : > { %v2843_v47 = vpop.f32.mrf.mxu0 }
 0x2ac   : > { %v2844_v19 = vadd.f32 %v2843_v47, %v2280_v1 }
 0x2ad   : > { %v5043_v48 = vpop.f32.mrf.mxu0 }
 0x2af   : > { %v2913_v49 = vpop.f32.mrf.mxu1 }
 0x2b0   : > { %v2983_v50 = vpop.f32.mrf.mxu0  ;;  %v2914_v22 = vadd.f32 %v2913_v49, %v2350_v3 }
 0x2b1   : > { %v5048_v51 = vpop.f32.mrf.mxu1  ;;  %v2984_v28 = vadd.f32 %v2983_v50, %v2420_v4 }
 0x2b2   : > { %v5053_v52 = vpop.f32.mrf.mxu0 }
 0x2b3   : > { %v3053_v53 = vpop.f32.mrf.mxu1 }
 0x2b4   : > { %v3123_v54 = vpop.f32.mrf.mxu0  ;;  %v3054_v32 = vadd.f32 %v3053_v53, %v2490_v8 }
 0x2b5   : > { %v5058_v55 = vpop.f32.mrf.mxu1  ;;  %v3124_v36 = vadd.f32 %v3123_v54, %v2560_v40 }
 0x2b6   : > { %v5063_v58 = vpop.f32.mrf.mxu0 }
 0x2b7   : > { %v3193_v59 = vpop.f32.mrf.mxu1 }
 0x2b8   : > { %v3194_v6 = vadd.f32 %v3193_v59, %v2630_v43 }
 0x2b9   : > { %v3263_v61 = vpop.f32.mrf.mxu0  ;;  %v5068_v56 = vpop.f32.mrf.mxu1 }
 0x2ba   : > { %v3264_v9 = vadd.f32 %v3263_v61, %v5868_v44 }
 0x2bb   : > { %v5073_v62 = vpop.f32.mrf.mxu0  ;;  %v3333_v57 = vpop.f32.mrf.mxu1 }
 0x2bc   : > { %v3334_v52 = vadd.f32 %v3333_v57, %v5870_v46 }
 0x2bd   : > { %v3440_v63 = vpop.f32.mrf.mxu0  ;;  %v5078_v5 = vpop.f32.mrf.mxu1 }
 0x2be   : > { %v3934_v23 = vadd.f32 %v3440_v63, %v2844_v19 }
 0x2bf   : > { %v5083_v10 = vpop.f32.mrf.mxu0  ;;  %v3510_v11 = vpop.f32.mrf.mxu1 }
 0x2c0   : > { %v3935_v29 = vadd.f32 %v3510_v11, %v2914_v22  ;;  %v3948_v33 = vadd.f32 %v3946_v27, %v3934_v23 }
 0x2c1   : > { %v3580_v12 = vpop.f32.mrf.mxu0  ;;  %v5088_v13 = vpop.f32.mrf.mxu1 }
 0x2c2   : > { %v3936_v34 = vadd.f32 %v3580_v12, %v2984_v28  ;;  %v3949_v39 = vadd.f32 %v3946_v27, %v3935_v29 }
 0x2c3   : > { %v5093_v14 = vpop.f32.mrf.mxu0  ;;  %v3650_v15 = vpop.f32.mrf.mxu1 }
 0x2c4   : > { %v3937_v1 = vadd.f32 %v3650_v15, %v3054_v32  ;;  %v3950_v42 = vadd.f32 %v3946_v27, %v3936_v34 }
 0x2c5   : > { %v3720_v60 = vpop.f32.mrf.mxu0  ;;  %v5098_v16 = vpop.f32.mrf.mxu1 }
 0x2c6   : > { %v3938_v4 = vadd.f32 %v3720_v60, %v3124_v36  ;;  %v3951_v49 = vadd.f32 %v3946_v27, %v3937_v1 }
 0x2c7   : > { %v5103_v17 = vpop.f32.mrf.mxu0  ;;  %v3790_v18 = vpop.f32.mrf.mxu1 }
 0x2c8   : > { %v3939_v47 = vadd.f32 %v3790_v18, %v3194_v6  ;;  %v3952_v53 = vadd.f32 %v3946_v27, %v3938_v4 }
 0x2c9   : > { %v3860_v20 = vpop.f32.mrf.mxu0  ;;  %v5108_v21 = vpop.f32.mrf.mxu1 }
 0x2ca   : > { %v3940_v44 = vadd.f32 %v3860_v20, %v3264_v9  ;;  %v3953_v56 = vadd.f32 %v3946_v27, %v3939_v47 }
 0x2cb   : > { %v5113_v25 = vpop.f32.mrf.mxu0  ;;  %v3930_v26 = vpop.f32.mrf.mxu1 }
 0x2cc   : > { %v3941_v5 = vadd.f32 %v3930_v26, %v3334_v52  ;;  %v3954_v13 = vadd.f32 %v3946_v27, %v3940_v44 }
 0x2cd   : > { %v4032_v30 = vpop.f32.mrf.mxu0  ;;  %v5118_v31 = vpop.f32.mrf.mxu1 }
 0x2ce   : > { %v4033_v35 = vadd.f32 %v4032_v30, %v5872_v24  ;;  %v3955_v18 = vadd.f32 %v3946_v27, %v3941_v5 }
 0x2cf   : > { %v5123_v37 = vpop.f32.mrf.mxu0  ;;  %v4102_v38 = vpop.f32.mrf.mxu1 }
 0x2d0   : > { %v4526_v2 = vadd.f32 %v4033_v35, %v3948_v33  ;;  %v4103_v3 = vadd.f32 %v4102_v38, %v5872_v24 }
 0x2d1   : > { %v4172_v7 = vpop.f32.mrf.mxu0  ;;  %v5128_v41 = vpop.f32.mrf.mxu1 }
 0x2d2   : > { %v4534_v8 = vmax.f32 %v4526_v2, 0.0  ;;  %v4527_v0 = vadd.f32 %v4103_v3, %v3949_v39  ;;  %v4173_v45 = vadd.f32 %v4172_v7, %v5872_v24 }
 0x2d3   : > { %v5133_v40 = vpop.f32.mrf.mxu0  ;;  %v4242_v48 = vpop.f32.mrf.mxu1 }
 0x2d4   : > { %4542 = vst [vmem:[%s5881_s16] sm:$0xff] %v4534_v8  ;;  %v4535_v43 = vmax.f32 %v4527_v0, 0.0  ;;  %v4528_v50 = vadd.f32 %v4173_v45, %v3950_v42  ;;  %v4243_v51 = vadd.f32 %v4242_v48, %v5872_v24 }
 0x2d5   : > { %v4312_v54 = vpop.f32.mrf.mxu0  ;;  %v5138_v55 = vpop.f32.mrf.mxu1 }
 0x2d6   : > { %4543 = vst [vmem:[%s5881_s16 + $0x8] sm:$0xff] %v4535_v43  ;;  %v4536_v58 = vmax.f32 %v4528_v50, 0.0  ;;  %v4529_v59 = vadd.f32 %v4243_v51, %v3951_v49  ;;  %v4313_v61 = vadd.f32 %v4312_v54, %v5872_v24 }
 0x2d7   : > { %v5143_v62 = vpop.f32.mrf.mxu0  ;;  %v4382_v63 = vpop.f32.mrf.mxu1 }
 0x2d8   : > { %4544 = vst [vmem:[%s5881_s16 + $0x10] sm:$0xff] %v4536_v58  ;;  %v4537_v10 = vmax.f32 %v4529_v59, 0.0  ;;  %v4530_v11 = vadd.f32 %v4313_v61, %v3952_v53  ;;  %v4383_v46 = vadd.f32 %v4382_v63, %v5872_v24 }
 0x2d9   : > { %v4452_v57 = vpop.f32.mrf.mxu0  ;;  %v5148_v12 = vpop.f32.mrf.mxu1 }
 0x2da   : > { %4545 = vst [vmem:[%s5881_s16 + $0x18] sm:$0xff] %v4537_v10  ;;  %v4538_v14 = vmax.f32 %v4530_v11, 0.0  ;;  %v4531_v15 = vadd.f32 %v4383_v46, %v3953_v56  ;;  %v4453_v60 = vadd.f32 %v4452_v57, %v5872_v24 }
 0x2db   : > { %v4522_v16 = vpop.f32.mrf.mxu1  ;;  %v5153_v17 = vpop.f32.mrf.mxu0 }
 0x2dc   : > { %4546 = vst [vmem:[%s5881_s16 + $0x20] sm:$0xff] %v4538_v14  ;;  %v4539_v19 = vmax.f32 %v4531_v15, 0.0  ;;  %v4532_v20 = vadd.f32 %v4453_v60, %v3954_v13  ;;  %v4523_v21 = vadd.f32 %v4522_v16, %v5872_v24 }
 0x2dd   : > { %v5158_v22 = vpop.f32.mrf.mxu1 }
 0x2de   : > { %4547 = vst [vmem:[%s5881_s16 + $0x28] sm:$0xff] %v4539_v19  ;;  %v4540_v23 = vmax.f32 %v4532_v20, 0.0  ;;  %v4533_v25 = vadd.f32 %v4523_v21, %v3955_v18 }
 0x2e0   : > { %4548 = vst [vmem:[%s5881_s16 + $0x30] sm:$0xff] %v4540_v23  ;;  %v4541_v26 = vmax.f32 %v4533_v25, 0.0 }
 0x2e2   : > { %4549 = vst [vmem:[%s5881_s16 + $0x38] sm:$0xff] %v4541_v26 }
 0x2e3   : > { %5259 = shalt.err (!%p5256_p0)
}
 0x2e4   : > { %s5260_s9 = scalar_lea.hbm %s5903_s21, 1024  ;;  %s5264_s15 = scalar_lea.hbm %s5955_s7, 2048 }
 0x2e5   : > { %p5261_p1 = scmp.ne.s32.totalorder %s5903_s21, %s5260_s9  ;;  %p5265_p4 = scmp.lt.s32.totalorder %s5903_s21, %s5955_s7 }
 0x2e6   : > { %p5266_p7 = scmp.lt.s32.totalorder %s5264_s15, %s5260_s9 }
 0x2e7   : > { %p5262_p2 = pnand %p5261_p1, %p5401_p5 }
 0x2e8   : > { %p5267_p8 = por %p5266_p7, %p5265_p4 }
 0x2e9   : > { %p5263_p3 = pneg %p5262_p2 }
 0x2eb   : > { %p5268_p6 = pnand %p5267_p8, %p5263_p3 }
 0x2ed   : > { %5271 = shalt.err (!%p5268_p6)
}
 0x2ee   : > { %s5321_s19 = smov 128   ;;  %s5322_s20 = smov 8  }
 0x2ef   : > { %5163 = dma.vmem_to_hbm [thread:$0]  (%p5401_p5), %s5897_s17, 1024, %s5903_s21, %s5908_s22, %s5321_s19, %s5321_s19, %s5322_s20  }
 0x2f0 PF: > { %p5175_p9 = scmp.ge.s32.totalorder %s5310_s27, 2  ;;  %s4579_s28 = sand.u32 1, %s5298_s24  }
 0x2f1   : > { %p5961_p10 = scmp.ne.s32.totalorder %s5957_s12, 0  ;;  %s4580_s23 = scalar_lea.sflag [#allocation4], %s4579_s28 }
 0x2f3   : > { %p5170_p11 = pnand %p5175_p9, %p5961_p10 }
 0x2f5   : > { %p5171_p12 = pneg %p5170_p11 }
 0x2f7   : > { %5293 = dma.done.wait (%p5171_p12), %s4580_s23, 1024  }
 0x2f8   : > { %5295 = vsyncadd (%p5171_p12), %s4580_s23, 4294966272  ;;  %p18_p13 = scmp.ge.s32.totalorder %s5388_s30, 4   ;;  %s5962_s24 = smov %s5302_s25 }
 0x2f9   : > { %s5963_s25 = smov %s5306_s26  ;;  %s5964_s26 = smov %s5399_s10 }
 0x2fa   : > { %s5965_s27 = smov %s5388_s30  ;;  %20 = sbr.rel (!%p18_p13) target bundleno = 4 (0x4), region = 92 }
 0x2ff   :  { %4585 = vsyncpa [#allocation3], 1 }
 0x300   :  { %4587 = vsyncpa [#allocation3 + $0x1], 1 }
 0x301   :  { %4588 = vsyncpa [#allocation4], 1 }
 0x302   :  { %4590 = vsyncpa [#allocation4 + $0x1], 1 }

</bundles_post_ra>
